<compile_context>
chip_gen: v5e
topology: v5e:2x2
jax: 0.10.0
libtpu: 0.0.40
codegen_flags: <defaults>
</compile_context>

<pallas_src>
import functools

import jax
import jax.numpy as jnp
from jax.experimental import pallas as pl
from jax.experimental.pallas import tpu as pltpu


# ----------------------------------------------------------------------------- constants
PACK = 32                        # samples packed per 128-lane row
IN_F, H1_F, H2_F, OUT_F = 4, 12, 6, 3
OUT_PAD_F = 4                    # per-sample output padded 3 -> 4 lanes (lane-dense stores)
ROW_IN = PACK * IN_F             # 128
ROW_H1 = PACK * H1_F             # 384
ROW_H2 = PACK * H2_F             # 192
ROW_OUT = PACK * OUT_PAD_F       # 128


# ----------------------------------------------------------------------------- kernel
def _mlp_packed_kernel(x_ref, w1_ref, b1_ref, w2_ref, b2_ref, w3_ref, b3_ref, o_ref):
    """One batch tile of the packed forward pass (all operands resident in VMEM).

    x_ref : (TB, 128) f32    w1_ref: (128, 384) bf16   b1_ref: (1, 384) f32
    w2_ref: (384, 192) bf16  b2_ref: (1, 192) f32
    w3_ref: (192, 128) bf16  b3_ref: (1, 128) f32      o_ref : (TB, 128) f32
    """
    # bf16 MXU operands + f32 accumulation; tanh in bf16 feeds the next matmul directly.
    x = x_ref[...].astype(jnp.bfloat16)

    h1 = jnp.dot(x, w1_ref[...], preferred_element_type=jnp.float32) + b1_ref[...]
    h1 = jnp.tanh(h1.astype(jnp.bfloat16))

    h2 = jnp.dot(h1, w2_ref[...], preferred_element_type=jnp.float32) + b2_ref[...]
    h2 = jnp.tanh(h2.astype(jnp.bfloat16))

    out = jnp.dot(h2, w3_ref[...], preferred_element_type=jnp.float32) + b3_ref[...]
    o_ref[...] = out.astype(o_ref.dtype)


# ----------------------------------------------------------------------------- packing helpers
def _round_up(n, m):
    return ((n + m - 1) // m) * m


def _block_diag(w, n):
    """(in, out) -> (n*in, n*out) block-diagonal matrix with n copies of w."""
    in_f, out_f = w.shape
    eye = jnp.eye(n, dtype=w.dtype)
    return (eye[:, None, :, None] * w[None, :, None, :]).reshape(n * in_f, n * out_f)


def pack_params(params, pack=PACK):
    """Pre-pack PyTorch-layout params (W: (out,in), b: (out,)) into lane-dense
    block-diagonal form (weights in bf16).  Done ONCE outside the jitted hot path."""
    w1, b1, w2, b2, w3, b3 = params
    w3p = jnp.pad(w3.T.astype(jnp.float32), ((0, 0), (0, OUT_PAD_F - OUT_F)))  # (6, 4)
    b3p = jnp.pad(b3.astype(jnp.float32), (0, OUT_PAD_F - OUT_F))              # (4,)
    return (
        _block_diag(w1.T.astype(jnp.float32), pack).astype(jnp.bfloat16),   # (128, 384)
        jnp.tile(b1.astype(jnp.float32), pack).reshape(1, -1),              # (1, 384)
        _block_diag(w2.T.astype(jnp.float32), pack).astype(jnp.bfloat16),   # (384, 192)
        jnp.tile(b2.astype(jnp.float32), pack).reshape(1, -1),              # (1, 192)
        _block_diag(w3p, pack).astype(jnp.bfloat16),                        # (192, 128)
        jnp.tile(b3p, pack).reshape(1, -1),                                 # (1, 128)
    )


# ----------------------------------------------------------------------------- forward
@functools.partial(jax.jit, static_argnames=("max_tb",))
def net_multitask_forward(x, packed_params, *, max_tb=2048):
    """x: (..., 4) float -> logits (N, 3), N = prod(leading dims)."""
    x2d = x.reshape(-1, IN_F).astype(jnp.float32)     # x.view(-1, 4)
    b = x2d.shape[0]

    # Pack 32 samples per 128-lane row; pad only to a multiple of PACK (<= 31 rows).
    pad = (-b) % PACK
    if pad:
        x2d = jnp.pad(x2d, ((0, pad), (0, 0)))
    r = (b + pad) // PACK                             # packed rows
    x_packed = x2d.reshape(r, ROW_IN)
    # TODO(synk): for a fused pipeline, accept pre-packed (rows, 128) input and return
    # the packed (rows, 128) output directly -- the (N,4)/(N,3) relayout copies in this
    # wrapper cost more HBM traffic than the kernel itself.

    # Tile size: multiple of 8 sublanes, never exceeding the array, and chosen so the
    # grid has >= 2 steps whenever possible (both v7x TensorCores get work).  The last
    # block may be ragged: rows are independent, OOB output rows are dropped.
    if r >= 8:
        tb = min(max_tb, max(8, _round_up(pl.cdiv(r, 2), 8)))
    else:
        tb = r                                        # single full-array block (tiny batch)
    grid = (pl.cdiv(r, tb),)

    w1, b1, w2, b2, w3, b3 = packed_params

    batch_in = pl.BlockSpec((tb, ROW_IN), lambda i: (i, 0))
    batch_out = pl.BlockSpec((tb, ROW_OUT), lambda i: (i, 0))
    # Grid-invariant specs: weights/biases are DMA'd once and stay resident.
    resident = lambda shape: pl.BlockSpec(shape, lambda i: (0, 0))

    n_rows = grid[0] * tb
    mac = ROW_IN * ROW_H1 + ROW_H1 * ROW_H2 + ROW_H2 * ROW_OUT     # per packed row
    weight_bytes = 2 * mac + 4 * (ROW_H1 + ROW_H2 + ROW_OUT)       # bf16 W + f32 b

    out_packed = pl.pallas_call(
        _mlp_packed_kernel,
        out_shape=jax.ShapeDtypeStruct((r, ROW_OUT), jnp.float32),
        grid=grid,
        in_specs=[
            batch_in,
            resident((ROW_IN, ROW_H1)), resident((1, ROW_H1)),
            resident((ROW_H1, ROW_H2)), resident((1, ROW_H2)),
            resident((ROW_H2, ROW_OUT)), resident((1, ROW_OUT)),
        ],
        out_specs=batch_out,
        compiler_params=pltpu.CompilerParams(
            dimension_semantics=("parallel",),
            vmem_limit_bytes=32 * 1024 * 1024,
        ),
        cost_estimate=pl.CostEstimate(
            flops=2 * mac * n_rows,                          # hardware (packed) flops
            transcendentals=(ROW_H1 + ROW_H2) * n_rows,      # 18 tanh per sample
            bytes_accessed=(4 * ROW_IN + 4 * ROW_OUT) * n_rows + weight_bytes,
        ),
    )(x_packed, w1, b1, w2, b2, w3, b3)

    # Un-pack: (r, 128) -> (r*PACK, 4) -> drop padded samples and the padded 4th lane.
    return out_packed.reshape(r * PACK, OUT_PAD_F)[:b, :OUT_F]


# ----------------------------------------------------------------------------- init & reference
def init_params(key):
    """nn.Linear default init: U(-1/sqrt(fan_in), +1/sqrt(fan_in)), W stored (out, in)."""
    def linear_init(k, out_f, in_f):
        k_w, k_b = jax.random.split(k)
        bound = 1.0 / (in_f ** 0.5)
        w = jax.random.uniform(k_w, (out_f, in_f), jnp.float32, -bound, bound)
        b = jax.random.uniform(k_b, (out_f,), jnp.float32, -bound, bound)
        return w, b

    k1, k2, k3 = jax.random.split(key, 3)
    w1, b1 = linear_init(k1, 12, 4)
    w2, b2 = linear_init(k2, 6, 12)
    w3, b3 = linear_init(k3, 3, 6)
    return (w1, b1, w2, b2, w3, b3)


def _reference_forward(x, params):
    """Pure-JAX f32 reference matching the PyTorch forward."""
    w1, b1, w2, b2, w3, b3 = params
    h = x.reshape(-1, 4).astype(jnp.float32)
    h = jnp.tanh(h @ w1.T + b1)
    h = jnp.tanh(h @ w2.T + b2)
    return h @ w3.T + b3


# ----------------------------------------------------------------------------- main
if __name__ == "__main__":
    key = jax.random.PRNGKey(0)
    k_params, k_x1, k_x2, k_x3 = jax.random.split(key, 4)

    params = init_params(k_params)
    packed = pack_params(params)          # one-time packing, outside the jitted hot path

    # bf16 MXU operands / bf16 tanh => ~2^-8 relative error per layer; compare against
    # the f32 reference with a correspondingly relaxed tolerance.
    TOL = dict(atol=6e-2, rtol=6e-2)

    # (2, 4, 16, 16) -> view(-1, 4) = 512 samples; r=16, tb=8, grid=(2,) (even split).
    x_main = jax.random.normal(k_x1, (2, 4, 16, 16), dtype=jnp.float32)
    out_main = jax.block_until_ready(net_multitask_forward(x_main, packed))
    ref_main = _reference_forward(x_main, params)
    assert out_main.shape == (512, 3), out_main.shape
    assert jnp.allclose(out_main, ref_main, **TOL), "main-batch mismatch"

    # Ragged batch: 300 samples -> pad to 320 -> r=10, tb=8, grid=(2,), partial last block.
    x_med = jax.random.normal(k_x2, (300, 4), dtype=jnp.float32)
    out_med = jax.block_until_ready(net_multitask_forward(x_med, packed))
    ref_med = _reference_forward(x_med, params)
    assert out_med.shape == (300, 3), out_med.shape
    assert jnp.allclose(out_med, ref_med, **TOL), "ragged-batch mismatch"

    # Tiny batch: 8 samples -> r=1, single full-array block.
    x_small = jax.random.normal(k_x3, (8, 4), dtype=jnp.float32)
    out_small = jax.block_until_ready(net_multitask_forward(x_small, packed))
    ref_small = _reference_forward(x_small, params)
    assert out_small.shape == (8, 3), out_small.shape
    assert jnp.allclose(out_small, ref_small, **TOL), "small-batch mismatch"

    print("KERNEL_OK")
</pallas_src>

<mosaic_0001>
module attributes {stable_mosaic.version = 11 : i64} {
  func.func @_mlp_packed_kernel(%arg0: i32, %arg1: memref<8x128xf32, #tpu.memory_space<vmem>>, %arg2: memref<128x384xbf16, #tpu.memory_space<vmem>>, %arg3: memref<1x384xf32, #tpu.memory_space<vmem>>, %arg4: memref<384x192xbf16, #tpu.memory_space<vmem>>, %arg5: memref<1x192xf32, #tpu.memory_space<vmem>>, %arg6: memref<192x128xbf16, #tpu.memory_space<vmem>>, %arg7: memref<1x128xf32, #tpu.memory_space<vmem>>, %arg8: memref<8x128xf32, #tpu.memory_space<vmem>>) attributes {dimension_semantics = [#tpu.dimension_semantics<parallel>], iteration_bounds = array<i64: 2>, scalar_prefetch = 0 : i64, scratch_operands = 0 : i64, tpu.core_type = #tpu.core_type<tc>, window_params = [{transform_indices = @transform_0, window_bounds = array<i64: 8, 128>}, {pipeline_mode = #tpu.pipeline_mode<synchronous>, transform_indices = @transform_1, window_bounds = array<i64: 128, 384>}, {pipeline_mode = #tpu.pipeline_mode<synchronous>, transform_indices = @transform_2, window_bounds = array<i64: 1, 384>}, {pipeline_mode = #tpu.pipeline_mode<synchronous>, transform_indices = @transform_3, window_bounds = array<i64: 384, 192>}, {pipeline_mode = #tpu.pipeline_mode<synchronous>, transform_indices = @transform_4, window_bounds = array<i64: 1, 192>}, {pipeline_mode = #tpu.pipeline_mode<synchronous>, transform_indices = @transform_5, window_bounds = array<i64: 192, 128>}, {pipeline_mode = #tpu.pipeline_mode<synchronous>, transform_indices = @transform_6, window_bounds = array<i64: 1, 128>}, {transform_indices = @transform_7, window_bounds = array<i64: 8, 128>}]} {
    %c0 = arith.constant 0 : index
    %c0_0 = arith.constant 0 : index
    %0 = vector.load %arg1[%c0, %c0_0] : memref<8x128xf32, #tpu.memory_space<vmem>>, vector<8x128xf32>
    %1 = arith.truncf %0 : vector<8x128xf32> to vector<8x128xbf16>
    %c0_1 = arith.constant 0 : index
    %c0_2 = arith.constant 0 : index
    %2 = vector.load %arg2[%c0_1, %c0_2] : memref<128x384xbf16, #tpu.memory_space<vmem>>, vector<128x384xbf16>
    %cst = arith.constant dense<0.000000e+00> : vector<8x384xf32>
    %3 = tpu.matmul %1, %2, %cst {dimension_numbers = #tpu.dot_dimension_numbers<[1], [0], [0], [1], [0, 0, 1, 1], [], []>} : vector<8x128xbf16>, vector<128x384xbf16>, vector<8x384xf32> -> vector<8x384xf32>
    %c0_3 = arith.constant 0 : index
    %c0_4 = arith.constant 0 : index
    %4 = vector.load %arg3[%c0_3, %c0_4] : memref<1x384xf32, #tpu.memory_space<vmem>>, vector<1x384xf32>
    %5 = vector.broadcast %4 : vector<1x384xf32> to vector<8x384xf32>
    %6 = arith.addf %3, %5 : vector<8x384xf32>
    %7 = arith.truncf %6 : vector<8x384xf32> to vector<8x384xbf16>
    %8 = math.tanh %7 : vector<8x384xbf16>
    %c0_5 = arith.constant 0 : index
    %c0_6 = arith.constant 0 : index
    %9 = vector.load %arg4[%c0_5, %c0_6] : memref<384x192xbf16, #tpu.memory_space<vmem>>, vector<384x192xbf16>
    %cst_7 = arith.constant dense<0.000000e+00> : vector<8x192xf32>
    %10 = tpu.matmul %8, %9, %cst_7 {dimension_numbers = #tpu.dot_dimension_numbers<[1], [0], [0], [1], [0, 0, 1, 1], [], []>} : vector<8x384xbf16>, vector<384x192xbf16>, vector<8x192xf32> -> vector<8x192xf32>
    %c0_8 = arith.constant 0 : index
    %c0_9 = arith.constant 0 : index
    %11 = vector.load %arg5[%c0_8, %c0_9] : memref<1x192xf32, #tpu.memory_space<vmem>>, vector<1x192xf32>
    %12 = vector.broadcast %11 : vector<1x192xf32> to vector<8x192xf32>
    %13 = arith.addf %10, %12 : vector<8x192xf32>
    %14 = arith.truncf %13 : vector<8x192xf32> to vector<8x192xbf16>
    %15 = math.tanh %14 : vector<8x192xbf16>
    %c0_10 = arith.constant 0 : index
    %c0_11 = arith.constant 0 : index
    %16 = vector.load %arg6[%c0_10, %c0_11] : memref<192x128xbf16, #tpu.memory_space<vmem>>, vector<192x128xbf16>
    %cst_12 = arith.constant dense<0.000000e+00> : vector<8x128xf32>
    %17 = tpu.matmul %15, %16, %cst_12 {dimension_numbers = #tpu.dot_dimension_numbers<[1], [0], [0], [1], [0, 0, 1, 1], [], []>} : vector<8x192xbf16>, vector<192x128xbf16>, vector<8x128xf32> -> vector<8x128xf32>
    %c0_13 = arith.constant 0 : index
    %c0_14 = arith.constant 0 : index
    %18 = vector.load %arg7[%c0_13, %c0_14] : memref<1x128xf32, #tpu.memory_space<vmem>>, vector<1x128xf32>
    %19 = vector.broadcast %18 : vector<1x128xf32> to vector<8x128xf32>
    %20 = arith.addf %17, %19 : vector<8x128xf32>
    %c0_15 = arith.constant 0 : index
    %c0_16 = arith.constant 0 : index
    %21 = vector.load %arg8[%c0_15, %c0_16] : memref<8x128xf32, #tpu.memory_space<vmem>>, vector<8x128xf32>
    tpu.vector_store %arg8[%c0_15, %c0_16], %20 {strides = array<i32>} : memref<8x128xf32, #tpu.memory_space<vmem>>, vector<8x128xf32>,
    return
  }
  func.func @transform_0(%arg0: i32) -> (i32, i32) {
    %c0_i32 = arith.constant 0 : i32
    %c0_i32_0 = arith.constant 0 : i32
    return %arg0, %c0_i32 : i32, i32
  }
  func.func @transform_1(%arg0: i32) -> (i32, i32) {
    %c0_i32 = arith.constant 0 : i32
    %c0_i32_0 = arith.constant 0 : i32
    %c0_i32_1 = arith.constant 0 : i32
    return %c0_i32, %c0_i32_0 : i32, i32
  }
  func.func @transform_2(%arg0: i32) -> (i32, i32) {
    %c0_i32 = arith.constant 0 : i32
    %c0_i32_0 = arith.constant 0 : i32
    %c0_i32_1 = arith.constant 0 : i32
    return %c0_i32, %c0_i32_0 : i32, i32
  }
  func.func @transform_3(%arg0: i32) -> (i32, i32) {
    %c0_i32 = arith.constant 0 : i32
    %c0_i32_0 = arith.constant 0 : i32
    %c0_i32_1 = arith.constant 0 : i32
    return %c0_i32, %c0_i32_0 : i32, i32
  }
  func.func @transform_4(%arg0: i32) -> (i32, i32) {
    %c0_i32 = arith.constant 0 : i32
    %c0_i32_0 = arith.constant 0 : i32
    %c0_i32_1 = arith.constant 0 : i32
    return %c0_i32, %c0_i32_0 : i32, i32
  }
  func.func @transform_5(%arg0: i32) -> (i32, i32) {
    %c0_i32 = arith.constant 0 : i32
    %c0_i32_0 = arith.constant 0 : i32
    %c0_i32_1 = arith.constant 0 : i32
    return %c0_i32, %c0_i32_0 : i32, i32
  }
  func.func @transform_6(%arg0: i32) -> (i32, i32) {
    %c0_i32 = arith.constant 0 : i32
    %c0_i32_0 = arith.constant 0 : i32
    %c0_i32_1 = arith.constant 0 : i32
    return %c0_i32, %c0_i32_0 : i32, i32
  }
  func.func @transform_7(%arg0: i32) -> (i32, i32) {
    %c0_i32 = arith.constant 0 : i32
    %c0_i32_0 = arith.constant 0 : i32
    return %arg0, %c0_i32 : i32, i32
  }
}

</mosaic_0001>

<bundles_post_ra>
// kernel: net_multitask_forward.1
= control target key start
LH: loop header
LB: loop body
LE: loop exit
PB: predicated region body
PF: predicated region fallthrough
CT: control target
= control target key end

     0   :  { %s1557_s24 = smov 0   ;;  %s2062_s0 = inlined_call_operand.vmem [shape: f32[16,128], index: 0, kind: input, shape index: {}]   ;;  %s2063_s1 = inlined_call_operand.vmem [shape: bf16[128,384], index: 1, kind: input, shape index: {}]   ;;  %s2064_s2 = inlined_call_operand.vmem [shape: f32[1,384], index: 2, kind: input, shape index: {}]   ;;  %s2065_s3 = inlined_call_operand.vmem [shape: bf16[384,192], index: 3, kind: input, shape index: {}]   ;;  %s2066_s4 = inlined_call_operand.vmem [shape: f32[1,192], index: 4, kind: input, shape index: {}]   ;;  %s2067_s5 = inlined_call_operand.vmem [shape: bf16[192,128], index: 5, kind: input, shape index: {}]   ;;  %s2068_s6 = inlined_call_operand.vmem [shape: f32[1,128], index: 6, kind: input, shape index: {}]   ;;  %s2069_s7 = inlined_call_operand.vmem [shape: f32[16,128], index: 7, kind: output, shape index: {}]  }
   0x1 LB: > { %s1060_s25 = sadd.s32 4294967295, %s1515_s24   ;;  %p1064_p0 = scmp.ge.s32.totalorder %s1515_s24, 1  ;;  %s1515_s24 = sphi %s1557_s24, %s17_s24  }
   0x2   : > { %p236_p1 = scmp.lt.s32.totalorder %s1515_s24, 3 }
   0x4   : > { %p237_p2 = pnand %p1064_p0, %p236_p1 }
   0x5   : > { %p266_p3 = scmp.lt.s32.totalorder (!%p237_p2), %s1060_s25, 1 }
   0x6   : > { %240 = sbr.rel (%p237_p2) target bundleno = 491 (0x1eb), region = 48 }
   0xb   : > { %v1153_v0 = vld [vmem:[%s2063_s1 + $0xa8] sm:$0xf]  ;;  %v1428_v1 = vld [vmem:[%s2063_s1 + $0xb0] sm:$0xf0]  ;;  %v1427_v2 = vld [vmem:[%s2063_s1 + $0xac] sm:$0xf] }
   0xc   : > { %v1154_v3 = vor.u32 %v1428_v1, %v1153_v0  ;;  %v1155_v4 = vld [vmem:[%s2063_s1 + $0xb4] sm:$0xf0]  ;;  %v1141_v5 = vld [vmem:[%s2063_s1 + $0x90] sm:$0xf]  ;;  %v1425_v6 = vld [vmem:[%s2063_s1 + $0x98] sm:$0xf0] }
   0xd   : > { %v1158_v7 = vor.u32 %v1427_v2, %v1155_v4  ;;  %v1424_v8 = vld [vmem:[%s2063_s1 + $0x94] sm:$0xf]  ;;  %v1143_v9 = vld [vmem:[%s2063_s1 + $0x9c] sm:$0xf0]  ;;  %v1161_v10 = vld [vmem:[%s2063_s1 + $0xb0] sm:$0xf]  ;;  %v1142_v11 = vor.u32 %v1425_v6, %v1141_v5 }
   0xe   : > { %445 = vmatpush.bf16.msra.mxu0 %v1154_v3  ;;  %v1429_v12 = vld [vmem:[%s2063_s1 + $0xb8] sm:$0xf0]  ;;  %v1146_v13 = vor.u32 %v1424_v8, %v1143_v9  ;;  %v1129_v15 = vld [vmem:[%s2063_s1 + $0x78] sm:$0xf]  ;;  %v1422_v16 = vld [vmem:[%s2063_s1 + $0x80] sm:$0xf0] }
   0xf   : > { %458 = vmatpush.bf16.msra.mxu1 %v1158_v7  ;;  %v1162_v14 = vor.u32 %v1429_v12, %v1161_v10  ;;  %v1149_v17 = vld [vmem:[%s2063_s1 + $0x98] sm:$0xf]  ;;  %v1421_v18 = vld [vmem:[%s2063_s1 + $0x7c] sm:$0xf]  ;;  %v1131_v19 = vld [vmem:[%s2063_s1 + $0x84] sm:$0xf0]  ;;  %v1130_v22 = vor.u32 %v1422_v16, %v1129_v15 }
  0x10   : > { %v1426_v20 = vld [vmem:[%s2063_s1 + $0xa0] sm:$0xf0]  ;;  %v1137_v23 = vld [vmem:[%s2063_s1 + $0x80] sm:$0xf]  ;;  %v1423_v24 = vld [vmem:[%s2063_s1 + $0x88] sm:$0xf0]  ;;  %v1134_v25 = vor.u32 %v1421_v18, %v1131_v19 }
  0x11   : > { %471 = vmatpush.bf16.msra.mxu2 %v1162_v14  ;;  %v1150_v21 = vor.u32 %v1426_v20, %v1149_v17  ;;  %v1117_v26 = vld [vmem:[%s2063_s1 + $0x60] sm:$0xf]  ;;  %v1419_v27 = vld [vmem:[%s2063_s1 + $0x68] sm:$0xf0]  ;;  %v1418_v28 = vld [vmem:[%s2063_s1 + $0x64] sm:$0xf]  ;;  %v1138_v30 = vor.u32 %v1423_v24, %v1137_v23 }
  0x12   : > { %446 = vmatpush.bf16.msra.mxu0 %v1142_v11  ;;  %v1119_v29 = vld [vmem:[%s2063_s1 + $0x6c] sm:$0xf0]  ;;  %v1118_v31 = vor.u32 %v1419_v27, %v1117_v26  ;;  %v1125_v32 = vld [vmem:[%s2063_s1 + $0x68] sm:$0xf]  ;;  %v1420_v33 = vld [vmem:[%s2063_s1 + $0x70] sm:$0xf0] }
  0x13   : > { %459 = vmatpush.bf16.msra.mxu1 %v1146_v13  ;;  %v1122_v34 = vor.u32 %v1418_v28, %v1119_v29  ;;  %v1105_v35 = vld [vmem:[%s2063_s1 + $0x48] sm:$0xf]  ;;  %v1416_v36 = vld [vmem:[%s2063_s1 + $0x50] sm:$0xf0]  ;;  %v1415_v37 = vld [vmem:[%s2063_s1 + $0x4c] sm:$0xf]  ;;  %v1126_v39 = vor.u32 %v1420_v33, %v1125_v32 }
  0x14   : > { %v1107_v38 = vld [vmem:[%s2063_s1 + $0x54] sm:$0xf0]  ;;  %v1093_v40 = vld [vmem:[%s2063_s1 + $0x30] sm:$0xf]  ;;  %v1106_v41 = vor.u32 %v1416_v36, %v1105_v35  ;;  %v1417_v43 = vld [vmem:[%s2063_s1 + $0x58] sm:$0xf0] }
  0x15   : > { %472 = vmatpush.bf16.msra.mxu2 %v1150_v21  ;;  %v1113_v42 = vld [vmem:[%s2063_s1 + $0x50] sm:$0xf]  ;;  %v1110_v44 = vor.u32 %v1415_v37, %v1107_v38  ;;  %v1413_v45 = vld [vmem:[%s2063_s1 + $0x38] sm:$0xf0]  ;;  %v1445_v47 = vld [vmem:[%s2065_s3 + $0x74] sm:$0xf0] }
  0x16   : > { %447 = vmatpush.bf16.msra.mxu0 %v1130_v22  ;;  %v1221_v46 = vld [vmem:[%s2065_s3 + $0x70] sm:$0xf]  ;;  %v1412_v48 = vld [vmem:[%s2063_s1 + $0x34] sm:$0xf]  ;;  %v1095_v49 = vld [vmem:[%s2063_s1 + $0x3c] sm:$0xf0]  ;;  %v1114_v51 = vor.u32 %v1417_v43, %v1113_v42  ;;  %v1094_v54 = vor.u32 %v1413_v45, %v1093_v40 }
  0x17   : > { %460 = vmatpush.bf16.msra.mxu1 %v1134_v25  ;;  %s2071_s25 = smov (!%p266_p3, %s1060_s25), 1  ;;  %v1222_v50 = vor.u32 %v1445_v47, %v1221_v46  ;;  %v1213_v52 = vld [vmem:[%s2065_s3 + $0x60] sm:$0xf]  ;;  %v1443_v53 = vld [vmem:[%s2065_s3 + $0x64] sm:$0xf0]  ;;  %v1098_v59 = vor.u32 %v1412_v48, %v1095_v49  ;;  %vm976_vm0 = vcmask 523264  }
  0x18   : > { %v1081_v55 = vld [vmem:[%s2063_s1 + $0x18] sm:$0xf]  ;;  %v1414_v57 = vld [vmem:[%s2063_s1 + $0x40] sm:$0xf0]  ;;  %v1214_v58 = vor.u32 %v1443_v53, %v1213_v52  ;;  %v1205_v61 = vld [vmem:[%s2065_s3 + $0x50] sm:$0xf] }
  0x19   : > { %473 = vmatpush.bf16.msra.mxu2 %v1138_v30  ;;  %v1101_v56 = vld [vmem:[%s2063_s1 + $0x38] sm:$0xf]  ;;  %790 = vmatpush.bf16.msra.mxu3 %v1222_v50  ;;  %v1410_v60 = vld [vmem:[%s2063_s1 + $0x20] sm:$0xf0]  ;;  %v1409_v63 = vld [vmem:[%s2063_s1 + $0x1c] sm:$0xf] }
  0x1a   : > { %448 = vmatpush.bf16.msra.mxu0 %v1118_v31  ;;  %v1441_v62 = vld [vmem:[%s2065_s3 + $0x54] sm:$0xf0]  ;;  %v1083_v0 = vld [vmem:[%s2063_s1 + $0x24] sm:$0xf0]  ;;  %s1065_s11 = sshll.u32 %s2071_s25, 3  ;;  %v1102_v1 = vor.u32 %v1414_v57, %v1101_v56  ;;  %v1082_v3 = vor.u32 %v1410_v60, %v1081_v55 }
  0x1b   : > { %461 = vmatpush.bf16.msra.mxu1 %v1122_v34  ;;  %v1069_v2 = vld [vmem:[%s2063_s1] sm:$0xf]  ;;  %v1407_v4 = vld [vmem:[%s2063_s1 + $0x8] sm:$0xf0]  ;;  %v1206_v7 = vor.u32 %v1441_v62, %v1205_v61  ;;  %v1086_v8 = vor.u32 %v1409_v63, %v1083_v0  ;;  %v1406_v9 = vld [vmem:[%s2063_s1 + $0x4] sm:$0xf]  ;;  %s269_s26 = scalar_lea.vmem %s2062_s0, %s1065_s11  ;;  %s273_s23 = scalar_lea.vmem %s2069_s7, %s1065_s11 }
  0x1c   : > { %v1089_v5 = vld [vmem:[%s2063_s1 + $0x20] sm:$0xf]  ;;  %v1411_v6 = vld [vmem:[%s2063_s1 + $0x28] sm:$0xf0]  ;;  %v1439_v11 = vld [vmem:[%s2065_s3 + $0x44] sm:$0xf0]  ;;  %v1070_v18 = vor.u32 %v1407_v4, %v1069_v2 }
  0x1d   : > { %474 = vmatpush.bf16.msra.mxu2 %v1126_v39  ;;  %791 = vmatpush.bf16.msra.mxu3 %v1214_v58  ;;  %v1197_v10 = vld [vmem:[%s2065_s3 + $0x40] sm:$0xf]  ;;  %v1071_v12 = vld [vmem:[%s2063_s1 + $0xc] sm:$0xf0]  ;;  %v1461_v14 = vld [vmem:[%s2065_s3 + $0xf4] sm:$0xf0]  ;;  %v1090_v15 = vor.u32 %v1411_v6, %v1089_v5 }
  0x1e   : > { %449 = vmatpush.bf16.msra.mxu0 %v1106_v41  ;;  %v1285_v13 = vld [vmem:[%s2065_s3 + $0xf0] sm:$0xf]  ;;  %v1077_v16 = vld [vmem:[%s2063_s1 + $0x8] sm:$0xf]  ;;  %v1408_v17 = vld [vmem:[%s2063_s1 + $0x10] sm:$0xf0]  ;;  %v1198_v20 = vor.u32 %v1439_v11, %v1197_v10  ;;  %v1074_v23 = vor.u32 %v1406_v9, %v1071_v12 }
  0x1f   : > { %462 = vmatpush.bf16.msra.mxu1 %v1110_v44  ;;  %v275_v19 = vld [vmem:[%s269_s26] sm:$0xff]  ;;  %v1349_v21 = vld [vmem:[%s2065_s3 + $0x170] sm:$0xf]  ;;  %v1477_v22 = vld [vmem:[%s2065_s3 + $0x174] sm:$0xf0]  ;;  %v1286_v24 = vor.u32 %v1461_v14, %v1285_v13  ;;  %v1078_v33 = vor.u32 %v1408_v17, %v1077_v16 }
  0x20   : > { %v1277_v25 = vld [vmem:[%s2065_s3 + $0xe0] sm:$0xf]  ;;  %v1444_v26 = vld [vmem:[%s2065_s3 + $0x74] sm:$0xf]  ;;  %v1223_v27 = vld [vmem:[%s2065_s3 + $0x78] sm:$0xf0]  ;;  %v1350_v31 = vor.u32 %v1477_v22, %v1349_v21  ;;  %v276_v32 = vpack.c.bf16 %v275_v19, %v275_v19 }
  0x21   : > { %475 = vmatpush.bf16.msra.mxu2 %v1114_v51  ;;  %792 = vmatpush.bf16.msra.mxu3 %v1206_v7  ;;  %v1459_v28 = vld [vmem:[%s2065_s3 + $0xe4] sm:$0xf0]  ;;  %v1189_v29 = vld [vmem:[%s2065_s3 + $0x30] sm:$0xf]  ;;  %v1437_v30 = vld [vmem:[%s2065_s3 + $0x34] sm:$0xf0]  ;;  %v1226_v36 = vor.u32 %v1444_v26, %v1223_v27 }
  0x22   : > { %450 = vmatpush.bf16.msra.mxu0 %v1094_v54  ;;  %v1341_v34 = vld [vmem:[%s2065_s3 + $0x160] sm:$0xf]  ;;  %v1475_v35 = vld [vmem:[%s2065_s3 + $0x164] sm:$0xf0]  ;;  %v1278_v37 = vor.u32 %v1459_v28, %v1277_v25  ;;  %v1269_v38 = vld [vmem:[%s2065_s3 + $0xd0] sm:$0xf]  ;;  %v1190_v39 = vor.u32 %v1437_v30, %v1189_v29 }
  0x23   : > { %463 = vmatpush.bf16.msra.mxu1 %v1098_v59  ;;  %v1442_v40 = vld [vmem:[%s2065_s3 + $0x64] sm:$0xf]  ;;  %v1215_v41 = vld [vmem:[%s2065_s3 + $0x68] sm:$0xf0]  ;;  %v1457_v42 = vld [vmem:[%s2065_s3 + $0xd4] sm:$0xf0]  ;;  %v1342_v45 = vor.u32 %v1475_v35, %v1341_v34 }
  0x24   : > { %v1181_v43 = vld [vmem:[%s2065_s3 + $0x20] sm:$0xf]  ;;  %v1435_v44 = vld [vmem:[%s2065_s3 + $0x24] sm:$0xf0]  ;;  %v1218_v46 = vor.u32 %v1442_v40, %v1215_v41  ;;  %v1270_v47 = vor.u32 %v1457_v42, %v1269_v38  ;;  %v1440_v50 = vld [vmem:[%s2065_s3 + $0x54] sm:$0xf] }
  0x25   : > { %476 = vmatpush.bf16.msra.mxu2 %v1102_v1  ;;  %793 = vmatpush.bf16.msra.mxu3 %v1198_v20  ;;  %v1261_v48 = vld [vmem:[%s2065_s3 + $0xc0] sm:$0xf]  ;;  %v1182_v49 = vor.u32 %v1435_v44, %v1181_v43  ;;  %v1207_v51 = vld [vmem:[%s2065_s3 + $0x58] sm:$0xf0]  ;;  %v1455_v52 = vld [vmem:[%s2065_s3 + $0xc4] sm:$0xf0] }
  0x26   : > { %451 = vmatpush.bf16.msra.mxu0 %v1082_v3  ;;  %v1173_v53 = vld [vmem:[%s2065_s3 + $0x10] sm:$0xf]  ;;  %v1433_v54 = vld [vmem:[%s2065_s3 + $0x14] sm:$0xf0]  ;;  %v1210_v55 = vor.u32 %v1440_v50, %v1207_v51  ;;  %v1262_v56 = vor.u32 %v1455_v52, %v1261_v48  ;;  %v1438_v58 = vld [vmem:[%s2065_s3 + $0x44] sm:$0xf] }
  0x27   : > { %464 = vmatpush.bf16.msra.mxu1 %v1086_v8  ;;  %v1174_v57 = vor.u32 %v1433_v54, %v1173_v53  ;;  %v1199_v59 = vld [vmem:[%s2065_s3 + $0x48] sm:$0xf0]  ;;  %v1253_v60 = vld [vmem:[%s2065_s3 + $0xb0] sm:$0xf]  ;;  %v1453_v61 = vld [vmem:[%s2065_s3 + $0xb4] sm:$0xf0] }
  0x28   : > { %v1202_v62 = vor.u32 %v1438_v58, %v1199_v59  ;;  %v1254_v63 = vor.u32 %v1453_v61, %v1253_v60  ;;  %v1245_v0 = vld [vmem:[%s2065_s3 + $0xa0] sm:$0xf]  ;;  %v1451_v1 = vld [vmem:[%s2065_s3 + $0xa4] sm:$0xf0]  ;;  %v1237_v3 = vld [vmem:[%s2065_s3 + $0x90] sm:$0xf] }
  0x29   : > { %477 = vmatpush.bf16.msra.mxu2 %v1090_v15  ;;  %794 = vmatpush.bf16.msra.mxu3 %v1190_v39  ;;  %v1246_v2 = vor.u32 %v1451_v1, %v1245_v0  ;;  %v1449_v4 = vld [vmem:[%s2065_s3 + $0x94] sm:$0xf0]  ;;  %v1165_v6 = vld [vmem:[%s2065_s3] sm:$0xf]  ;;  %v1431_v7 = vld [vmem:[%s2065_s3 + $0x4] sm:$0xf0] }
  0x2a   : > { %452 = vmatpush.bf16.msra.mxu0 %v1070_v18  ;;  %v1238_v5 = vor.u32 %v1449_v4, %v1237_v3  ;;  %v1229_v8 = vld [vmem:[%s2065_s3 + $0x80] sm:$0xf]  ;;  %v1166_v9 = vor.u32 %v1431_v7, %v1165_v6  ;;  %v1447_v10 = vld [vmem:[%s2065_s3 + $0x84] sm:$0xf0]  ;;  %v1436_v11 = vld [vmem:[%s2065_s3 + $0x34] sm:$0xf] }
  0x2b   : > { %465 = vmatpush.bf16.msra.mxu1 %v1074_v23  ;;  %v1191_v12 = vld [vmem:[%s2065_s3 + $0x38] sm:$0xf0]  ;;  %v1230_v13 = vor.u32 %v1447_v10, %v1229_v8  ;;  %v1460_v15 = vld [vmem:[%s2065_s3 + $0xf4] sm:$0xf]  ;;  %v1333_v20 = vld [vmem:[%s2065_s3 + $0x150] sm:$0xf] }
  0x2c   : > { %v1194_v14 = vor.u32 %v1436_v11, %v1191_v12  ;;  %v1287_v16 = vld [vmem:[%s2065_s3 + $0xf8] sm:$0xf0]  ;;  %v1476_v18 = vld [vmem:[%s2065_s3 + $0x174] sm:$0xf]  ;;  %v1473_v22 = vld [vmem:[%s2065_s3 + $0x154] sm:$0xf0] }
  0x2d   : > { %453 = vmatmul.bf16.vlgmr.msra.gmra.mxu0 %v276_v32  ;;  %478 = vmatpush.bf16.msra.mxu2 %v1078_v33  ;;  %v1290_v17 = vor.u32 %v1460_v15, %v1287_v16  ;;  %v1351_v19 = vld [vmem:[%s2065_s3 + $0x178] sm:$0xf0]  ;;  %v1334_v23 = vor.u32 %v1473_v22, %v1333_v20  ;;  %v1183_v25 = vld [vmem:[%s2065_s3 + $0x28] sm:$0xf0]  ;;  %v1458_v26 = vld [vmem:[%s2065_s3 + $0xe4] sm:$0xf] }
  0x2e   : > { %803 = vmatpush.bf16.msrb.mxu0 %v1286_v24  ;;  %466 = vmatmul.bf16.vlgmr.msra.gmra.mxu1 %v276_v32  ;;  %v1354_v21 = vor.u32 %v1476_v18, %v1351_v19  ;;  %v1434_v24 = vld [vmem:[%s2065_s3 + $0x24] sm:$0xf]  ;;  %v1279_v28 = vld [vmem:[%s2065_s3 + $0xe8] sm:$0xf0]  ;;  %v1325_v33 = vld [vmem:[%s2065_s3 + $0x140] sm:$0xf] }
  0x2f   : > { %816 = vmatpush.bf16.msrb.mxu1 %v1350_v31  ;;  %795 = vmatpush.bf16.msra.mxu3 %v1182_v49  ;;  %v1186_v27 = vor.u32 %v1434_v24, %v1183_v25  ;;  %v1474_v29 = vld [vmem:[%s2065_s3 + $0x164] sm:$0xf]  ;;  %v1343_v30 = vld [vmem:[%s2065_s3 + $0x168] sm:$0xf0]  ;;  %v1282_v31 = vor.u32 %v1458_v26, %v1279_v28  ;;  %v1471_v34 = vld [vmem:[%s2065_s3 + $0x144] sm:$0xf0] }
  0x30   : > { %479 = vmatmul.bf16.vlgmr.msra.gmra.mxu2 %v276_v32  ;;  %v1346_v32 = vor.u32 %v1474_v29, %v1343_v30  ;;  %v1326_v35 = vor.u32 %v1471_v34, %v1325_v33  ;;  %v1456_v38 = vld [vmem:[%s2065_s3 + $0xd4] sm:$0xf]  ;;  %v1271_v40 = vld [vmem:[%s2065_s3 + $0xd8] sm:$0xf0]  ;;  %v1430_v48 = vld [vmem:[%s2065_s3 + $0x4] sm:$0xf] }
  0x31   : > { %829 = vmatpush.bf16.msrb.mxu2 %v1226_v36  ;;  %v1432_v36 = vld [vmem:[%s2065_s3 + $0x14] sm:$0xf]  ;;  %v1335_v42 = vld [vmem:[%s2065_s3 + $0x158] sm:$0xf0]  ;;  %v1274_v43 = vor.u32 %v1456_v38, %v1271_v40  ;;  %v1167_v49 = vld [vmem:[%s2065_s3 + $0x8] sm:$0xf0] }
  0x32   : > { %804 = vmatpush.bf16.msrb.mxu0 %v1278_v37  ;;  %v1175_v37 = vld [vmem:[%s2065_s3 + $0x18] sm:$0xf0]  ;;  %v1472_v41 = vld [vmem:[%s2065_s3 + $0x154] sm:$0xf]  ;;  %v1454_v50 = vld [vmem:[%s2065_s3 + $0xc4] sm:$0xf]  ;;  %v1170_v51 = vor.u32 %v1430_v48, %v1167_v49 }
  0x33   : > { %817 = vmatpush.bf16.msrb.mxu1 %v1342_v45  ;;  %796 = vmatpush.bf16.msra.mxu3 %v1174_v57  ;;  %v1178_v39 = vor.u32 %v1432_v36, %v1175_v37  ;;  %v1338_v44 = vor.u32 %v1472_v41, %v1335_v42  ;;  %v1317_v45 = vld [vmem:[%s2065_s3 + $0x130] sm:$0xf]  ;;  %v1263_v52 = vld [vmem:[%s2065_s3 + $0xc8] sm:$0xf0]  ;;  %v1470_v53 = vld [vmem:[%s2065_s3 + $0x144] sm:$0xf] }
  0x34   : > { %v1327_v54 = vld [vmem:[%s2065_s3 + $0x148] sm:$0xf0]  ;;  %v1309_v57 = vld [vmem:[%s2065_s3 + $0x120] sm:$0xf]  ;;  %v1467_v58 = vld [vmem:[%s2065_s3 + $0x124] sm:$0xf0] }
  0x35   : > { %830 = vmatpush.bf16.msrb.mxu2 %v1218_v46  ;;  %v1469_v46 = vld [vmem:[%s2065_s3 + $0x134] sm:$0xf0]  ;;  %v1310_v59 = vor.u32 %v1467_v58, %v1309_v57  ;;  %v1452_v60 = vld [vmem:[%s2065_s3 + $0xb4] sm:$0xf]  ;;  %v1255_v61 = vld [vmem:[%s2065_s3 + $0xb8] sm:$0xf0] }
  0x36   : > { %805 = vmatpush.bf16.msrb.mxu0 %v1270_v47  ;;  %v1318_v47 = vor.u32 %v1469_v46, %v1317_v45  ;;  %v1319_v0 = vld [vmem:[%s2065_s3 + $0x138] sm:$0xf0]  ;;  %v1465_v3 = vld [vmem:[%s2065_s3 + $0x114] sm:$0xf0]  ;;  %v1247_v6 = vld [vmem:[%s2065_s3 + $0xa8] sm:$0xf0] }
  0x37   : > { %797 = vmatpush.bf16.msra.mxu3 %v1166_v9  ;;  %818 = vmatpush.bf16.msrb.mxu1 %v1334_v23  ;;  %v1466_v7 = vld [vmem:[%s2065_s3 + $0x124] sm:$0xf]  ;;  %v1311_v9 = vld [vmem:[%s2065_s3 + $0x128] sm:$0xf0]  ;;  %v1293_v11 = vld [vmem:[%s2065_s3 + $0x100] sm:$0xf] }
  0x38   : > { %v1314_v10 = vor.u32 %v1466_v7, %v1311_v9  ;;  %v1463_v12 = vld [vmem:[%s2065_s3 + $0x104] sm:$0xf0]  ;;  %v1239_v15 = vld [vmem:[%s2065_s3 + $0x98] sm:$0xf0]  ;;  %v1464_v16 = vld [vmem:[%s2065_s3 + $0x114] sm:$0xf] }
  0x39   : > { %831 = vmatpush.bf16.msrb.mxu2 %v1210_v55  ;;  %v1266_v55 = vor.u32 %v1454_v50, %v1263_v52  ;;  %v1303_v18 = vld [vmem:[%s2065_s3 + $0x118] sm:$0xf0]  ;;  %v1446_v20 = vld [vmem:[%s2065_s3 + $0x84] sm:$0xf]  ;;  %v309_v23 = vld [vmem:[%s2064_s2] sm:$0x7] }
  0x3a   : > { %806 = vmatpush.bf16.msrb.mxu0 %v1262_v56  ;;  %v1330_v56 = vor.u32 %v1470_v53, %v1327_v54  ;;  %v1306_v19 = vor.u32 %v1464_v16, %v1303_v18  ;;  %v1462_v22 = vld [vmem:[%s2065_s3 + $0x104] sm:$0xf]  ;;  %v1295_v24 = vld [vmem:[%s2065_s3 + $0x108] sm:$0xf0]  ;;  %v312_v28 = vperm.slane %v309_v23, 1 }
  0x3b   : > { %842 = vmatpush.bf16.msrb.mxu3 %v1290_v17  ;;  %819 = vmatpush.bf16.msrb.mxu1 %v1326_v35  ;;  %v1298_v26 = vor.u32 %v1462_v22, %v1295_v24  ;;  %v1484_v35 = vld [vmem:[%s2067_s5 + $0x30] sm:$0xff]  ;;  %v1483_v53 = vld [vmem:[%s2067_s5 + $0x28] sm:$0xff]  ;;  %v1482_v54 = vld [vmem:[%s2067_s5 + $0x20] sm:$0xff] }
  0x3c   : > { %v1479_v57 = vld [vmem:[%s2067_s5 + $0x8] sm:$0xff]  ;;  %v1478_v58 = vld [vmem:[%s2067_s5] sm:$0xff] }
  0x3d   : > { %832 = vmatpush.bf16.msrb.mxu2 %v1202_v62  ;;  %v1468_v62 = vld [vmem:[%s2065_s3 + $0x134] sm:$0xf] }
  0x3e   : > { %807 = vmatpush.bf16.msrb.mxu0 %v1254_v63  ;;  %v1258_v63 = vor.u32 %v1452_v60, %v1255_v61  ;;  %v1322_v1 = vor.u32 %v1468_v62, %v1319_v0  ;;  %v1488_v60 = vld [vmem:[%s2067_s5 + $0x50] sm:$0xff]  ;;  %v544_v61 = vld [vmem:[%s2066_s4] sm:$0x3]  ;;  %v1487_v62 = vld [vmem:[%s2067_s5 + $0x48] sm:$0xff] }
  0x3f   : > { %843 = vmatpush.bf16.msrb.mxu3 %v1282_v31  ;;  %820 = vmatpush.bf16.msrb.mxu1 %v1318_v47  ;;  %v546_v0 = vperm.slane %v544_v61, 0 }
  0x41   : > { %833 = vmatpush.bf16.msrb.mxu2 %v1194_v14  ;;  %v1448_v14 = vld [vmem:[%s2065_s3 + $0x94] sm:$0xf] }
  0x42   : > { %808 = vmatpush.bf16.msrb.mxu0 %v1246_v2  ;;  %v1301_v2 = vld [vmem:[%s2065_s3 + $0x110] sm:$0xf]  ;;  %v1242_v17 = vor.u32 %v1448_v14, %v1239_v15 }
  0x43   : > { %844 = vmatpush.bf16.msrb.mxu3 %v1274_v43  ;;  %821 = vmatpush.bf16.msrb.mxu1 %v1310_v59  ;;  %v1302_v4 = vor.u32 %v1465_v3, %v1301_v2  ;;  %v1489_v59 = vld [vmem:[%s2067_s5 + $0x58] sm:$0xff] }
  0x45   : > { %834 = vmatpush.bf16.msrb.mxu2 %v1186_v27  ;;  %v311_v27 = vperm.slane %v309_v23, 0 }
  0x46   : > { %809 = vmatpush.bf16.msrb.mxu0 %v1238_v5  ;;  %v1450_v5 = vld [vmem:[%s2065_s3 + $0xa4] sm:$0xf] }
  0x47   : > { %845 = vmatpush.bf16.msrb.mxu3 %v1266_v55  ;;  %v1250_v8 = vor.u32 %v1450_v5, %v1247_v6  ;;  %822 = vmatpush.bf16.msrb.mxu1 %v1302_v4  ;;  %v1481_v55 = vld [vmem:[%s2067_s5 + $0x18] sm:$0xff] }
  0x49   : > { %835 = vmatpush.bf16.msrb.mxu2 %v1178_v39  ;;  %v313_v39 = vperm.slane %v309_v23, 2 }
  0x4a   : > { %810 = vmatpush.bf16.msrb.mxu0 %v1230_v13  ;;  %v1294_v13 = vor.u32 %v1463_v12, %v1293_v11 }
  0x4b   : > { %846 = vmatpush.bf16.msrb.mxu3 %v1258_v63 }
  0x4c   : > { %823 = vmatpush.bf16.msrb.mxu1 %v1294_v13  ;;  %v547_v13 = vperm.slane %v544_v61, 1 }
  0x4d   : > { %836 = vmatpush.bf16.msrb.mxu2 %v1170_v51 }
  0x4e   : > { %855 = vmatpush.bf16.msra.mxu0 %v1354_v21  ;;  %v1231_v21 = vld [vmem:[%s2065_s3 + $0x88] sm:$0xf0] }
  0x4f   : > { %847 = vmatpush.bf16.msrb.mxu3 %v1250_v8  ;;  %v1234_v25 = vor.u32 %v1446_v20, %v1231_v21 }
  0x51   : > { %997 = vmatpush.bf16.msra.mxu2 %v1489_v59 }
  0x52   : > { %856 = vmatpush.bf16.msra.mxu0 %v1346_v32  ;;  %v1485_v32 = vld [vmem:[%s2067_s5 + $0x38] sm:$0xff] }
  0x53   : > { %848 = vmatpush.bf16.msrb.mxu3 %v1242_v17  ;;  %980 = vmatpush.bf16.msra.mxu1 %v1485_v32 }
  0x55   : > { %998 = vmatpush.bf16.msra.mxu2 %v1488_v60 }
  0x56   : > { %857 = vmatpush.bf16.msra.mxu0 %v1338_v44 }
  0x57   : > { %849 = vmatpush.bf16.msrb.mxu3 %v1234_v25  ;;  %981 = vmatpush.bf16.msra.mxu1 %v1484_v35 }
  0x59   : > { %999 = vmatpush.bf16.msra.mxu2 %v1487_v62 }
  0x5a   : > { %858 = vmatpush.bf16.msra.mxu0 %v1330_v56  ;;  %v1480_v56 = vld [vmem:[%s2067_s5 + $0x10] sm:$0xff] }
  0x5b   : > { %982 = vmatpush.bf16.msra.mxu1 %v1483_v53 }
  0x5e   : > { %859 = vmatpush.bf16.msra.mxu0 %v1322_v1  ;;  %v1486_v1 = vld [vmem:[%s2067_s5 + $0x40] sm:$0xff] }
  0x5f   : > { %983 = vmatpush.bf16.msra.mxu1 %v1482_v54  ;;  %1000 = vmatpush.bf16.msra.mxu2 %v1486_v1 }
  0x62   : > { %860 = vmatpush.bf16.msra.mxu0 %v1314_v10 }
  0x63   : > { %984 = vmatpush.bf16.msra.mxu1 %v1481_v55 }
  0x66   : > { %861 = vmatpush.bf16.msra.mxu0 %v1306_v19 }
  0x67   : > { %985 = vmatpush.bf16.msra.mxu1 %v1480_v56 }
  0x6a   : > { %862 = vmatpush.bf16.msra.mxu0 %v1298_v26 }
  0x6b   : > { %986 = vmatpush.bf16.msra.mxu1 %v1479_v57 }
  0x6f   : > { %987 = vmatpush.bf16.msra.mxu1 %v1478_v58 }
  0xaa   : > { %v454_v29 = vpop.f32.mrf.mxu0 }
  0xab   : > { %v455_v30 = vadd.f32 %v454_v29, %v311_v27  ;;  %v467_v31 = vpop.f32.mrf.mxu1 }
  0xac   : > { %v468_v33 = vadd.f32 %v467_v31, %v312_v28 }
  0xad   : > { %v484_v34 = vpack.c.bf16 %v455_v30, %v455_v30  ;;  %v1498_v30 = vld [vmem:[%s2068_s6] ss:$0 sm:$0xff] }
  0xae   : > { %v485_v36 = vpack.c.bf16 %v468_v33, %v468_v33 }
  0xaf   : > { %v487_v37 = vunpack.c.l.bf16 %v484_v34 }
  0xb0   : > { %v488_v38 = vunpack.c.l.bf16 %v485_v36 }
  0xb1   : > { %1499 = vtanh.f32 %v487_v37 }
  0xb2   : > { %1501 = vtanh.f32 %v488_v38  ;;  %v456_v40 = vpop.f32.mrf.mxu0 }
  0xb3   : > { %v469_v41 = vpop.f32.mrf.mxu1  ;;  %v480_v42 = vpop.f32.mrf.mxu2 }
  0xb4   : > { %v481_v43 = vadd.f32 %v480_v42, %v313_v39 }
  0xb6   : > { %v486_v44 = vpack.c.bf16 %v481_v43, %v481_v43 }
  0xb7   : > { %v1500_v45 = vpop.eup %1499 }
  0xb8   : > { %v1502_v46 = vpop.eup %1501  ;;  %v489_v47 = vunpack.c.l.bf16 %v486_v44  ;;  %v493_v48 = vpack.c.bf16 %v1500_v45, %v1500_v45 }
  0xb9   : > { %v494_v49 = vpack.c.bf16 %v1502_v46, %v1502_v46 }
  0xba   : > { %1503 = vtanh.f32 %v489_v47  ;;  %798 = vmatmul.bf16.vlgmr.msra.gmra.mxu3 %v493_v48  ;;  %837 = vmatmul.bf16.vlgmr.msrb.gmra.mxu2 %v493_v48 }
  0xbb   : > { %811 = vmatmul.bf16.vlgmr.msrb.gmra.mxu0 %v494_v49  ;;  %v482_v50 = vpop.f32.mrf.mxu2 }
  0xc0   : > { %v1504_v51 = vpop.eup %1503 }
  0xc1   : > { %v495_v52 = vpack.c.bf16 %v1504_v51, %v1504_v51 }
  0xc3   : > { %824 = vmatmul.bf16.vlgmr.msrb.gmra.mxu1 %v495_v52 }
  0xca   : > { %850 = vmatmul.bf16.vlgmr.msrb.gmra.mxu3 %v494_v49 }
  0xcb   : > { %863 = vmatmul.bf16.vlgmr.msra.gmra.mxu0 %v495_v52 }
 0x138   : > { %v812_v63 = vpop.f32.mrf.mxu0 }
 0x13d   : > { %v799_v2 = vpop.f32.mrf.mxu3  ;;  %v838_v3 = vpop.f32.mrf.mxu2 }
 0x13e   : > { %v800_v4 = vadd.f32 %v799_v2, %v546_v0  ;;  %v839_v16 = vadd.f32 %v838_v3, %v547_v13 }
 0x140   : > { %v814_v5 = vpop.f32.mrf.mxu0  ;;  %v813_v6 = vadd.f32 %v812_v63, %v800_v4  ;;  %v825_v7 = vpop.f32.mrf.mxu1 }
 0x142   : > { %v826_v8 = vadd.f32 %v825_v7, %v813_v6 }
 0x144   : > { %v868_v9 = vpack.c.bf16 %v826_v8, %v826_v8 }
 0x145   : > { %v801_v10 = vpop.f32.mrf.mxu3  ;;  %v840_v11 = vpop.f32.mrf.mxu2 }
 0x146   : > { %v870_v12 = vunpack.c.l.bf16 %v868_v9 }
 0x148   : > { %1505 = vtanh.f32 %v870_v12  ;;  %v864_v14 = vpop.f32.mrf.mxu0  ;;  %v827_v15 = vpop.f32.mrf.mxu1 }
 0x14d   : > { %v851_v17 = vpop.f32.mrf.mxu3 }
 0x14e   : > { %v1506_v18 = vpop.eup %1505  ;;  %v852_v19 = vadd.f32 %v851_v17, %v839_v16 }
 0x14f   : > { %v874_v20 = vpack.c.bf16 %v1506_v18, %v1506_v18 }
 0x150   : > { %v865_v21 = vadd.f32 %v864_v14, %v852_v19  ;;  %v866_v22 = vpop.f32.mrf.mxu0 }
 0x151   : > { %988 = vmatmul.bf16.vlgmr.msra.gmra.mxu1 %v874_v20 }
 0x152   : > { %v869_v23 = vpack.c.bf16 %v865_v21, %v865_v21 }
 0x154   : > { %v871_v24 = vunpack.c.l.bf16 %v869_v23 }
 0x155   : > { %v853_v25 = vpop.f32.mrf.mxu3 }
 0x156   : > { %1507 = vtanh.f32 %v871_v24 }
 0x15c   : > { %v1508_v26 = vpop.eup %1507 }
 0x15d   : > { %v875_v27 = vpack.c.bf16 %v1508_v26, %v1508_v26 }
 0x15f   : > { %1403 = vmatmul.msk.bf16.vlgmr.msra.gmra.mxu2 %vm976_vm0, %v875_v27 }
 0x1ce   : > { %v989_v28 = vpop.f32.mrf.mxu1 }
 0x1cf   : > { %v990_v31 = vadd.f32 %v1498_v30, %v989_v28 }
 0x1d6   : > { %v991_v29 = vpop.f32.mrf.mxu1 }
 0x1e2   : > { %v1002_v32 = vpop.f32.mrf.mxu2 }
 0x1e3   : > { %v1003_v33 = vadd.f32 %v1002_v32, %v990_v31 }
 0x1e5   : > { %1006 = vst [vmem:[%s273_s23] sm:$0xff] %v1003_v33 }
 0x1ea   : > { %v1004_v34 = vpop.f32.mrf.mxu2 }
 0x1eb PF: > { %s17_s24 = sadd.s32 1, %s1515_s24  }
 0x1ec   : > { %p14_p4 = scmp.ge.s32.totalorder %s17_s24, 4  }
 0x1ee   :  { %16 = sbr.rel (!%p14_p4) target bundleno = 1 (0x1), region = 78 }

</bundles_post_ra>
